<compile_context>
chip_gen: v7x
topology: tpu7x:2x2x1
jax: 0.10.0
libtpu: 0.0.40
codegen_flags: <defaults>
</compile_context>

<pallas_src>
import math

import numpy as np
import jax
import jax.numpy as jnp
from jax.experimental import pallas as pl
from jax.experimental.pallas import tpu as pltpu


_VMEM_LIMIT = 48 * 1024 * 1024   # <= 64 MiB physical VMEM on v7x; plenty on v5e/v6e
_BN_EPS = 1e-5


def _rup(x, m):
    return ((x + m - 1) // m) * m


# ------------------------------ Pallas kernels ------------------------------

def _mm_kernel(a_ref, b_ref, o_ref, acc_ref):
    @pl.when(pl.program_id(2) == 0)
    def _init():
        acc_ref[...] = jnp.zeros_like(acc_ref)

    acc_ref[...] += jnp.dot(a_ref[...], b_ref[...],
                            preferred_element_type=jnp.float32)

    @pl.when(pl.program_id(2) == pl.num_programs(2) - 1)
    def _store():
        o_ref[...] = acc_ref[...]


def _mm_stats_kernel(a_ref, b_ref, o_ref, st_ref, acc_ref):
    # Same as _mm_kernel, plus per-output-channel sum / sumsq partials for the
    # following BatchNorm (fused stats; removes a full HBM read of the conv output).
    @pl.when(pl.program_id(2) == 0)
    def _init():
        acc_ref[...] = jnp.zeros_like(acc_ref)

    acc_ref[...] += jnp.dot(a_ref[...], b_ref[...],
                            preferred_element_type=jnp.float32)

    @pl.when(pl.program_id(2) == pl.num_programs(2) - 1)
    def _store():
        y = acc_ref[...]
        o_ref[...] = y
        s0 = jnp.sum(y, axis=0, keepdims=True)
        s1 = jnp.sum(y * y, axis=0, keepdims=True)
        st_ref[...] = jnp.concatenate([s0, s1], axis=0)[None]


def _affine_kernel(x_ref, s_ref, b_ref, o_ref):
    o_ref[...] = x_ref[...] * s_ref[...] + b_ref[...]


def _affine_relu_kernel(x_ref, s_ref, b_ref, o_ref):
    o_ref[...] = jnp.maximum(x_ref[...] * s_ref[...] + b_ref[...], 0.0)


def _residual_kernel(y_ref, s_ref, b_ref, r_ref, sd_ref, bd_ref,
                     pre_ref, post_ref, st_ref):
    # BN2 affine + (downsample BN affine) + residual add + ReLU + stats of "pre".
    pre = (y_ref[...] * s_ref[...] + b_ref[...]
           + r_ref[...] * sd_ref[...] + bd_ref[...])
    pre_ref[...] = pre
    post_ref[...] = jnp.maximum(pre, 0.0)
    s0 = jnp.sum(pre, axis=0, keepdims=True)
    s1 = jnp.sum(pre * pre, axis=0, keepdims=True)
    st_ref[...] = jnp.concatenate([s0, s1], axis=0)[None]


def _add_stats_kernel(a_ref, b_ref, o_ref, st_ref):
    s = a_ref[...] + b_ref[...]
    o_ref[...] = s
    s0 = jnp.sum(s, axis=0, keepdims=True)
    s1 = jnp.sum(s * s, axis=0, keepdims=True)
    st_ref[...] = jnp.concatenate([s0, s1], axis=0)[None]


def _stats_kernel(x_ref, st_ref):
    x = x_ref[...]
    s0 = jnp.sum(x, axis=0, keepdims=True)
    s1 = jnp.sum(x * x, axis=0, keepdims=True)
    st_ref[...] = jnp.concatenate([s0, s1], axis=0)[None]


def _max9_kernel(x_ref, o_ref):
    r = x_ref[0]
    for i in range(1, 9):
        r = jnp.maximum(r, x_ref[i])
    o_ref[...] = r


# ------------------------------ pallas_call wrappers ------------------------------

def _ew_call(kernel, grid, in_specs, out_shapes, out_specs, *args):
    return pl.pallas_call(
        kernel,
        grid_spec=pltpu.PrefetchScalarGridSpec(
            num_scalar_prefetch=0, grid=grid,
            in_specs=in_specs, out_specs=out_specs),
        out_shape=out_shapes,
        compiler_params=pltpu.CompilerParams(
            dimension_semantics=("parallel",) * len(grid),
            vmem_limit_bytes=_VMEM_LIMIT),
    )(*args)


def _tile_spec(tr, L):
    return pl.BlockSpec((tr, L), lambda i: (i, 0))


def _vec_spec(L):
    return pl.BlockSpec((1, L), lambda i: (0, 0))


def _part_spec(L):
    return pl.BlockSpec((1, 2, L), lambda i: (i, 0, 0))


def _ew_layout(shape):
    # Lane-dense 2D layout for NHWC tensors: channels on lanes if C % 128 == 0,
    # else fold W*C onto lanes; otherwise fall back (tiny tensors only).
    N, H, W, C = shape
    if C % 128 == 0:
        return N * H * W, C, 1
    if (W * C) % 128 == 0:
        return N * H, W * C, W
    return N * H * W, C, 1


def _row_tile(R, L, n_bufs, budget=6 * 1024 * 1024):
    # Largest row tile (divisor of padded R) whose double-buffered working set
    # stays well under VMEM; enables HBM<->VMEM pipelining for elementwise kernels.
    Rp = _rup(R, 8)
    cap = max(8, budget // (n_bufs * 2 * L * 4))
    tr = 8
    for cand in (1024, 512, 256, 128, 64, 32, 16, 8):
        if cand <= cap and Rp % cand == 0:
            tr = cand
            break
    return tr, Rp


def _lane_vec(v, fold):
    v = jnp.asarray(v, jnp.float32)
    if fold > 1:
        v = jnp.tile(v, fold)
    return v.reshape(1, -1)


def _stats_to_c(st_L, fold, C):
    if fold > 1:
        st_L = st_L.reshape(2, fold, C).sum(axis=1)
    return st_L[0], st_L[1]


def pallas_matmul(a, w, n_true, with_stats=False):
    # a: (M, Kp) bf16 activation / im2col matrix.  w: (Kp, Np) bf16 pre-padded weights.
    M, K = a.shape
    Kp, Np = w.shape
    assert K == Kp
    if M >= 256:
        tm = 256
        Mp = _rup(M, tm)
    else:
        Mp = _rup(M, 8)
        tm = Mp
    tn = 256 if Np % 256 == 0 else 128     # v6e/v7x MXU width; v5e would prefer 128
    tk = 512 if Kp % 512 == 0 else (256 if Kp % 256 == 0 else 128)
    if Mp != M:
        a = jnp.pad(a, ((0, Mp - M), (0, 0)))
    grid = (Mp // tm, Np // tn, Kp // tk)
    in_specs = [pl.BlockSpec((tm, tk), lambda i, j, k: (i, k)),
                pl.BlockSpec((tk, tn), lambda i, j, k: (k, j))]
    y_spec = pl.BlockSpec((tm, tn), lambda i, j, k: (i, j))
    y_shape = jax.ShapeDtypeStruct((Mp, Np), jnp.float32)
    cparams = pltpu.CompilerParams(
        dimension_semantics=("parallel", "parallel", "arbitrary"),
        vmem_limit_bytes=_VMEM_LIMIT)
    scratch = [pltpu.VMEM((tm, tn), jnp.float32)]

    if with_stats:
        st_shape = jax.ShapeDtypeStruct((Mp // tm, 2, Np), jnp.float32)
        st_spec = pl.BlockSpec((1, 2, tn), lambda i, j, k: (i, 0, j))
        y, st = pl.pallas_call(
            _mm_stats_kernel,
            grid_spec=pltpu.PrefetchScalarGridSpec(
                num_scalar_prefetch=0, grid=grid,
                in_specs=in_specs, out_specs=[y_spec, st_spec],
                scratch_shapes=scratch),
            out_shape=[y_shape, st_shape],
            compiler_params=cparams)(a, w)
        st = jnp.sum(st, axis=0)[:, :n_true]          # (2, Cout)
    else:
        (y,) = pl.pallas_call(
            _mm_kernel,
            grid_spec=pltpu.PrefetchScalarGridSpec(
                num_scalar_prefetch=0, grid=grid,
                in_specs=in_specs, out_specs=[y_spec],
                scratch_shapes=scratch),
            out_shape=[y_shape],
            compiler_params=cparams)(a, w)
        st = None

    if Mp != M or Np != n_true:
        y = y[:M, :n_true]
    return y, st


def pallas_affine(x, scale_c, shift_c, relu):
    shp = x.shape
    R, L, fold = _ew_layout(shp)
    x2 = x.reshape(R, L)
    tr, Rp = _row_tile(R, L, 2)
    if Rp != R:
        x2 = jnp.pad(x2, ((0, Rp - R), (0, 0)))
    s = _lane_vec(scale_c, fold)
    b = _lane_vec(shift_c, fold)
    grid = (Rp // tr,)
    kern = _affine_relu_kernel if relu else _affine_kernel
    (y,) = _ew_call(
        kern, grid,
        [_tile_spec(tr, L), _vec_spec(L), _vec_spec(L)],
        [jax.ShapeDtypeStruct((Rp, L), jnp.float32)],
        [_tile_spec(tr, L)],
        x2, s, b)
    if Rp != R:
        y = y[:R]
    return y.reshape(shp)


def pallas_residual_bn(y2, s2_c, b2_c, res, sd_c, bd_c):
    shp = y2.shape
    N, H, W, C = shp
    R, L, fold = _ew_layout(shp)
    tr, Rp = _row_tile(R, L, 5)
    y2d = y2.reshape(R, L)
    r2d = res.reshape(R, L)
    pad = Rp - R
    if pad:
        y2d = jnp.pad(y2d, ((0, pad), (0, 0)))
        r2d = jnp.pad(r2d, ((0, pad), (0, 0)))
    s2 = _lane_vec(s2_c, fold)
    b2 = _lane_vec(b2_c, fold)
    sd = _lane_vec(sd_c, fold)
    bd = _lane_vec(bd_c, fold)
    grid = (Rp // tr,)
    nt = Rp // tr
    pre, post, st = _ew_call(
        _residual_kernel, grid,
        [_tile_spec(tr, L), _vec_spec(L), _vec_spec(L),
         _tile_spec(tr, L), _vec_spec(L), _vec_spec(L)],
        [jax.ShapeDtypeStruct((Rp, L), jnp.float32),
         jax.ShapeDtypeStruct((Rp, L), jnp.float32),
         jax.ShapeDtypeStruct((nt, 2, L), jnp.float32)],
        [_tile_spec(tr, L), _tile_spec(tr, L), _part_spec(L)],
        y2d, s2, b2, r2d, sd, bd)
    st = jnp.sum(st, axis=0)
    if pad:  # padded zero-rows contributed (b2 + bd) per lane; remove exactly
        v = (b2 + bd)[0]
        st = st - jnp.stack([pad * v, pad * (v * v)])
    ssum, ssq = _stats_to_c(st, fold, C)
    if pad:
        pre = pre[:R]
        post = post[:R]
    return pre.reshape(shp), post.reshape(shp), (ssum, ssq, N * H * W)


def pallas_add_stats(a, b):
    shp = a.shape
    N, H, W, C = shp
    R, L, fold = _ew_layout(shp)
    tr, Rp = _row_tile(R, L, 4)
    a2 = a.reshape(R, L)
    b2 = b.reshape(R, L)
    pad = Rp - R
    if pad:
        a2 = jnp.pad(a2, ((0, pad), (0, 0)))
        b2 = jnp.pad(b2, ((0, pad), (0, 0)))
    grid = (Rp // tr,)
    nt = Rp // tr
    s, st = _ew_call(
        _add_stats_kernel, grid,
        [_tile_spec(tr, L), _tile_spec(tr, L)],
        [jax.ShapeDtypeStruct((Rp, L), jnp.float32),
         jax.ShapeDtypeStruct((nt, 2, L), jnp.float32)],
        [_tile_spec(tr, L), _part_spec(L)],
        a2, b2)
    stL = jnp.sum(st, axis=0)
    ssum, ssq = _stats_to_c(stL, fold, C)
    if pad:
        s = s[:R]
    return s.reshape(shp), (ssum, ssq, N * H * W)


def pallas_stats(x):
    shp = x.shape
    N, H, W, C = shp
    R, L, fold = _ew_layout(shp)
    tr, Rp = _row_tile(R, L, 2)
    x2 = x.reshape(R, L)
    if Rp != R:
        x2 = jnp.pad(x2, ((0, Rp - R), (0, 0)))
    grid = (Rp // tr,)
    nt = Rp // tr
    (st,) = _ew_call(
        _stats_kernel, grid,
        [_tile_spec(tr, L)],
        [jax.ShapeDtypeStruct((nt, 2, L), jnp.float32)],
        [_part_spec(L)],
        x2)
    stL = jnp.sum(st, axis=0)
    ssum, ssq = _stats_to_c(stL, fold, C)
    return ssum, ssq, N * H * W


# ------------------------------ NN building blocks ------------------------------

def _bn_scale_shift(ssum, ssumsq, count, gamma, beta):
    mean = ssum / count
    var = jnp.maximum(ssumsq / count - mean * mean, 0.0)   # biased (training-mode) var
    scale = gamma * jax.lax.rsqrt(var + _BN_EPS)
    shift = beta - mean * scale
    return scale, shift


def bn_relu(x, stats, gamma, beta, relu=True):
    scale, shift = _bn_scale_shift(stats[0], stats[1], stats[2], gamma, beta)
    return pallas_affine(x, scale, shift, relu)


def conv2d(x, wm, stride=1, padding=0, with_stats=False):
    # im2col (bf16 JAX glue) + tiled MXU matmul; 1x1 convs skip im2col entirely.
    # TODO(synk): a direct-conv kernel (halo'd row tiles, manual DMA) would avoid
    #             materializing the kh*kw-expanded im2col tensor in HBM for 3x3/7x7.
    N, H, W, Cin = x.shape
    k = wm['k']
    xb = x.astype(jnp.bfloat16)
    if k == 1:                         # all 1x1 convs here use padding=0
        xs = xb[:, ::stride, ::stride, :] if stride > 1 else xb
        Ho, Wo = xs.shape[1], xs.shape[2]
        patches = xs.reshape(N * Ho * Wo, Cin)
    else:
        xp = jnp.pad(xb, ((0, 0), (padding, padding), (padding, padding), (0, 0)))
        Hp, Wp = H + 2 * padding, W + 2 * padding
        Ho = (Hp - k) // stride + 1
        Wo = (Wp - k) // stride + 1
        cols = [xp[:, di:di + stride * (Ho - 1) + 1:stride,
                   dj:dj + stride * (Wo - 1) + 1:stride, :]
                for di in range(k) for dj in range(k)]
        patches = jnp.concatenate(cols, axis=-1).reshape(N * Ho * Wo, k * k * Cin)
    Kt = patches.shape[1]
    if Kt < wm['kp']:
        patches = jnp.pad(patches, ((0, 0), (0, wm['kp'] - Kt)))
    y, st = pallas_matmul(patches, wm['w'], n_true=wm['cout'], with_stats=with_stats)
    y = y.reshape(N, Ho, Wo, wm['cout'])
    if with_stats:
        return y, (st[0], st[1], N * Ho * Wo)
    return y, None


def maxpool_3x3_s2_p1(x):
    # nn.MaxPool2d(3, stride=2, padding=1): -inf padding, max over 9 taps.
    N, H, W, C = x.shape
    xp = jnp.pad(x, ((0, 0), (1, 1), (1, 1), (0, 0)), constant_values=-np.inf)
    Ho = (H + 2 - 3) // 2 + 1
    Wo = (W + 2 - 3) // 2 + 1
    wins = [xp[:, di:di + 2 * (Ho - 1) + 1:2, dj:dj + 2 * (Wo - 1) + 1:2, :]
            for di in range(3) for dj in range(3)]
    R, L, _ = _ew_layout((N, Ho, Wo, C))
    stacked = jnp.stack(wins, 0).reshape(9, R, L)
    tr, Rp = _row_tile(R, L, 11)
    if Rp != R:
        stacked = jnp.pad(stacked, ((0, 0), (0, Rp - R), (0, 0)),
                          constant_values=-np.inf)
    grid = (Rp // tr,)
    (y,) = _ew_call(
        _max9_kernel, grid,
        [pl.BlockSpec((9, tr, L), lambda i: (0, i, 0))],
        [jax.ShapeDtypeStruct((Rp, L), jnp.float32)],
        [_tile_spec(tr, L)],
        stacked)
    if Rp != R:
        y = y[:R]
    return y.reshape(N, Ho, Wo, C)


def _bilinear_matrix(in_size, out_size):
    # F.interpolate(mode='bilinear', align_corners=False) as an (out,in) matrix.
    m = np.zeros((out_size, in_size), np.float32)
    if in_size == 1:
        m[:, 0] = 1.0
        return jnp.asarray(m)
    scale = in_size / out_size
    for i in range(out_size):
        src = max((i + 0.5) * scale - 0.5, 0.0)
        i0 = min(int(math.floor(src)), in_size - 1)
        i1 = min(i0 + 1, in_size - 1)
        w1 = src - i0
        m[i, i0] += 1.0 - w1
        m[i, i1] += w1
    return jnp.asarray(m)


def _adaptive_avg_matrix(in_size, out_size):
    m = np.zeros((out_size, in_size), np.float32)
    for i in range(out_size):
        s = (i * in_size) // out_size
        e = -((-(i + 1) * in_size) // out_size)
        m[i, s:e] = 1.0 / (e - s)
    return jnp.asarray(m)


def _apply_separable(x, mh, mw):
    # Left to XLA per perf review: tiny (8..64-row) matrices would starve the MXU
    # sublanes and force two full-tensor HBM transposes if done as Pallas matmuls.
    y = jnp.einsum('ph,nhwc->npwc', mh, x)
    return jnp.einsum('qw,npwc->npqc', mw, y)


def upsample_bilinear(x, size):
    H, W = x.shape[1], x.shape[2]
    if (H, W) == tuple(size):
        return x
    return _apply_separable(x, _bilinear_matrix(H, size[0]), _bilinear_matrix(W, size[1]))


def adaptive_avg_pool(x, size):
    H, W = x.shape[1], x.shape[2]
    return _apply_separable(x, _adaptive_avg_matrix(H, size[0]),
                            _adaptive_avg_matrix(W, size[1]))


# ------------------------------ parameter init ------------------------------

class _Keys:
    def __init__(self, key):
        self.key = key

    def __call__(self):
        self.key, sub = jax.random.split(self.key)
        return sub


def _conv_param(kg, cout, cin, k):
    # kaiming_normal_(mode='fan_out', nonlinearity='relu'); weight matrix is stored
    # matmul-ready: (kh*kw*Cin, Cout), zero-padded to multiples of 128, bf16.
    fan_out = cout * k * k
    std = math.sqrt(2.0 / fan_out)
    w = std * jax.random.normal(kg(), (cout, cin, k, k), jnp.float32)
    wmat = jnp.transpose(w, (2, 3, 1, 0)).reshape(k * k * cin, cout)
    Kp = _rup(k * k * cin, 128)
    Np = _rup(cout, 128)
    wmat = jnp.pad(wmat, ((0, Kp - k * k * cin), (0, Np - cout))).astype(jnp.bfloat16)
    return {'w': wmat, 'k': k, 'cout': cout, 'kp': Kp}


def _bn(c):
    return jnp.ones((c,), jnp.float32), jnp.zeros((c,), jnp.float32)


def _bnreluconv_params(kg, cin, cout, k):
    g, b = _bn(cin)
    return {'bn_g': g, 'bn_b': b, 'conv': _conv_param(kg, cout, cin, k)}


def _basic_block_params(kg, cin, planes, stride):
    p = {'conv1': _conv_param(kg, planes, cin, 3),
         'conv2': _conv_param(kg, planes, planes, 3),
         'stride': stride}
    p['bn1_g'], p['bn1_b'] = _bn(planes)
    p['bn2_g'], p['bn2_b'] = _bn(planes)
    if stride != 1 or cin != planes:
        p['down_conv'] = _conv_param(kg, planes, cin, 1)
        p['down_bn_g'], p['down_bn_b'] = _bn(planes)
    return p


def init_resnet_params(key, layers=(1, 1, 1, 1), num_features=128):
    kg = _Keys(key)
    P = {'conv1': _conv_param(kg, 64, 3, 7)}
    P['bn1_g'], P['bn1_b'] = _bn(64)

    inplanes = 64
    planes_list = (64, 128, 256, 512)
    strides = (1, 2, 2, 2)
    skip_ins = []
    for li, (planes, n_blocks, stride) in enumerate(zip(planes_list, layers, strides)):
        blocks, cin = [], inplanes
        for bi in range(n_blocks):
            blocks.append(_basic_block_params(kg, cin, planes, stride if bi == 0 else 1))
            cin = planes
        P['layer%d' % (li + 1)] = blocks
        inplanes = planes
        if li < 3:
            skip_ins.append(inplanes)          # 64, 128, 256

    ups = []
    for skip_in in skip_ins:                   # built after layer1/2/3, then reversed
        ups.append({'bottleneck': _bnreluconv_params(kg, skip_in, num_features, 1),
                    'blend': _bnreluconv_params(kg, num_features, num_features, 3)})
    P['upsample'] = list(reversed(ups))

    # SpatialPyramidPooling(inplanes=512, num_levels=3, bt=128, level=42, out=128)
    num_levels = 3
    bt_size = num_features
    level_size = num_features // num_levels
    spp = {'spp_bn': _bnreluconv_params(kg, inplanes, bt_size, 1)}
    final = bt_size
    for i in range(num_levels):
        final += level_size
        spp['spp%d' % i] = _bnreluconv_params(kg, bt_size, level_size, 1)
    spp['spp_fuse'] = _bnreluconv_params(kg, final, num_features, 1)
    P['spp'] = spp

    P['norm_g'], P['norm_b'] = _bn(num_features)
    return P


# ------------------------------ forward pass ------------------------------

def bn_relu_conv(x, x_stats, p, with_out_stats=False):
    # _BNReluConv: BN -> ReLU -> Conv(k, padding=k//2, bias=False)
    xn = bn_relu(x, x_stats, p['bn_g'], p['bn_b'], relu=True)
    k = p['conv']['k']
    return conv2d(xn, p['conv'], stride=1, padding=k // 2, with_stats=with_out_stats)


def basic_block_fwd(x, p):
    stride = p['stride']
    y1, st1 = conv2d(x, p['conv1'], stride=stride, padding=1, with_stats=True)
    y1 = bn_relu(y1, st1, p['bn1_g'], p['bn1_b'], relu=True)
    y2, st2 = conv2d(y1, p['conv2'], stride=1, padding=1, with_stats=True)
    s2, b2 = _bn_scale_shift(st2[0], st2[1], st2[2], p['bn2_g'], p['bn2_b'])
    C = p['conv2']['cout']
    if 'down_conv' in p:
        r, std_ = conv2d(x, p['down_conv'], stride=stride, padding=0, with_stats=True)
        sd, bd = _bn_scale_shift(std_[0], std_[1], std_[2],
                                 p['down_bn_g'], p['down_bn_b'])
    else:
        r = x
        sd = jnp.ones((C,), jnp.float32)
        bd = jnp.zeros((C,), jnp.float32)
    # one fused kernel: bn2 affine + downsample-bn affine + add + relu + skip stats
    pre, post, pre_stats = pallas_residual_bn(y2, s2, b2, r, sd, bd)
    return post, (pre, pre_stats)              # (relu(out+res), out+res) as in SwiftNet


def resblock_fwd(x, blocks):
    skip = None
    for p in blocks:
        x, skip = basic_block_fwd(x, p)
    return x, skip


def upsample_module_fwd(x, skip, skip_stats, p, last=False):
    sk, _ = bn_relu_conv(skip, skip_stats, p['bottleneck'])       # 1x1 bottleneck
    size = (sk.shape[1], sk.shape[2])
    xu = upsample_bilinear(x, size)
    s, s_stats = pallas_add_stats(xu, sk)                         # add + fused stats
    return bn_relu_conv(s, s_stats, p['blend'], with_out_stats=last)


def spp_fwd(x, x_stats, spp, grids=(8, 4, 2, 1), num_levels=3):
    H, W = x.shape[1], x.shape[2]
    ar = W / H
    x1, _ = bn_relu_conv(x, x_stats, spp['spp_bn'])
    levels = [x1]
    for i in range(num_levels):
        gh = grids[i]
        gw = max(1, round(ar * grids[i]))
        xp_ = adaptive_avg_pool(x1, (gh, gw))
        st = pallas_stats(xp_)
        lvl, _ = bn_relu_conv(xp_, st, spp['spp%d' % i])
        lvl = upsample_bilinear(lvl, (H, W))
        levels.append(lvl)
    cat = jnp.concatenate(levels, axis=-1)
    cst = pallas_stats(cat)
    out, _ = bn_relu_conv(cat, cst, spp['spp_fuse'])
    return out


def resnet_forward(params, image_nchw):
    x = jnp.transpose(image_nchw, (0, 2, 3, 1)).astype(jnp.float32)   # NCHW -> NHWC

    # ---- forward_down ----
    y, st = conv2d(x, params['conv1'], stride=2, padding=3, with_stats=True)
    y = bn_relu(y, st, params['bn1_g'], params['bn1_b'], relu=True)
    y = maxpool_3x3_s2_p1(y)
    feats = []
    for li in range(1, 5):
        y, skip = resblock_fwd(y, params['layer%d' % li])
        feats.append(skip)                     # (pre-activation skip, its BN stats)

    spp_out = spp_fwd(feats[3][0], feats[3][1], params['spp'])

    # ---- forward_up ----
    z = spp_out
    skips = [feats[2], feats[1], feats[0]]
    z_stats = None
    for idx, (sk, up) in enumerate(zip(skips, params['upsample'])):
        z, z_stats = upsample_module_fwd(z, sk[0], sk[1], up,
                                         last=(idx == len(skips) - 1))

    # final: relu(norm(.)) -- stats come fused from the last blend conv matmul
    z = bn_relu(z, z_stats, params['norm_g'], params['norm_b'], relu=True)
    return jnp.transpose(z, (0, 3, 1, 2))                             # NHWC -> NCHW


# ------------------------------ main ------------------------------

if __name__ == "__main__":
    root = jax.random.PRNGKey(0)
    pkey, xkey = jax.random.split(root)
    params = init_resnet_params(pkey, layers=(1, 1, 1, 1), num_features=128)
    image = jax.random.normal(xkey, (2, 3, 64, 64), jnp.float32)       # NCHW input

    out = resnet_forward(params, image)
    out = jax.block_until_ready(out)
    assert out.shape == (2, 128, 16, 16), out.shape
    assert bool(jnp.all(jnp.isfinite(out)))
    print("KERNEL_OK")
</pallas_src>

<mosaic_0001>
module attributes {stable_mosaic.version = 11 : i64} {
  func.func @_mm_stats_kernel(%arg0: i32, %arg1: i32, %arg2: i32, %arg3: memref<256x256xbf16, #tpu.memory_space<vmem>>, %arg4: memref<256x128xbf16, #tpu.memory_space<vmem>>, %arg5: memref<256x128xf32, #tpu.memory_space<vmem>>, %arg6: memref<1x2x128xf32, #tpu.memory_space<vmem>>, %arg7: memref<256x128xf32, #tpu.memory_space<vmem>>) attributes {dimension_semantics = [#tpu.dimension_semantics<parallel>, #tpu.dimension_semantics<parallel>, #tpu.dimension_semantics<arbitrary>], iteration_bounds = array<i64: 8, 1, 1>, scalar_prefetch = 0 : i64, scratch_operands = 1 : i64, tpu.core_type = #tpu.core_type<tc>, window_params = [{transform_indices = @transform_0, window_bounds = array<i64: 256, 256>}, {transform_indices = @transform_1, window_bounds = array<i64: 256, 128>}, {transform_indices = @transform_2, window_bounds = array<i64: 256, 128>}, {transform_indices = @transform_3, window_bounds = array<i64: 1, 2, 128>}]} {
    %c0_i32 = arith.constant 0 : i32
    %0 = arith.cmpi eq, %arg2, %c0_i32 : i32
    %1 = arith.extui %0 : i1 to i32
    %c0_i32_0 = arith.constant 0 : i32
    %2 = arith.cmpi ne, %1, %c0_i32_0 : i32
    scf.if %2 {
      %cst_10 = arith.constant 0.000000e+00 : f32
      %12 = vector.broadcast %cst_10 : f32 to vector<256x128xf32>
      %c0_11 = arith.constant 0 : index
      %c0_12 = arith.constant 0 : index
      %13 = vector.load %arg7[%c0_11, %c0_12] : memref<256x128xf32, #tpu.memory_space<vmem>>, vector<256x128xf32>
      tpu.vector_store %arg7[%c0_11, %c0_12], %12 {strides = array<i32>} : memref<256x128xf32, #tpu.memory_space<vmem>>, vector<256x128xf32>,
    } else {
    }
    %c0 = arith.constant 0 : index
    %c0_1 = arith.constant 0 : index
    %3 = vector.load %arg7[%c0, %c0_1] : memref<256x128xf32, #tpu.memory_space<vmem>>, vector<256x128xf32>
    %c0_2 = arith.constant 0 : index
    %c0_3 = arith.constant 0 : index
    %4 = vector.load %arg3[%c0_2, %c0_3] : memref<256x256xbf16, #tpu.memory_space<vmem>>, vector<256x256xbf16>
    %c0_4 = arith.constant 0 : index
    %c0_5 = arith.constant 0 : index
    %5 = vector.load %arg4[%c0_4, %c0_5] : memref<256x128xbf16, #tpu.memory_space<vmem>>, vector<256x128xbf16>
    %cst = arith.constant dense<0.000000e+00> : vector<256x128xf32>
    %6 = tpu.matmul %4, %5, %cst {dimension_numbers = #tpu.dot_dimension_numbers<[1], [0], [0], [1], [0, 0, 1, 1], [], []>} : vector<256x256xbf16>, vector<256x128xbf16>, vector<256x128xf32> -> vector<256x128xf32>
    %7 = arith.addf %3, %6 : vector<256x128xf32>
    %c0_6 = arith.constant 0 : index
    %c0_7 = arith.constant 0 : index
    %8 = vector.load %arg7[%c0_6, %c0_7] : memref<256x128xf32, #tpu.memory_space<vmem>>, vector<256x128xf32>
    tpu.vector_store %arg7[%c0_6, %c0_7], %7 {strides = array<i32>} : memref<256x128xf32, #tpu.memory_space<vmem>>, vector<256x128xf32>,
    %c0_i32_8 = arith.constant 0 : i32
    %9 = arith.cmpi eq, %arg2, %c0_i32_8 : i32
    %10 = arith.extui %9 : i1 to i32
    %c0_i32_9 = arith.constant 0 : i32
    %11 = arith.cmpi ne, %10, %c0_i32_9 : i32
    scf.if %11 {
      %c0_10 = arith.constant 0 : index
      %c0_11 = arith.constant 0 : index
      %12 = vector.load %arg7[%c0_10, %c0_11] : memref<256x128xf32, #tpu.memory_space<vmem>>, vector<256x128xf32>
      %c0_12 = arith.constant 0 : index
      %c0_13 = arith.constant 0 : index
      %13 = vector.load %arg5[%c0_12, %c0_13] : memref<256x128xf32, #tpu.memory_space<vmem>>, vector<256x128xf32>
      tpu.vector_store %arg5[%c0_12, %c0_13], %12 {strides = array<i32>} : memref<256x128xf32, #tpu.memory_space<vmem>>, vector<256x128xf32>,
      %cst_14 = arith.constant dense<0.000000e+00> : vector<128xf32>
      %14 = vector.multi_reduction <add>, %12, %cst_14 [0] : vector<256x128xf32> to vector<128xf32>
      %15 = vector.shape_cast %14 : vector<128xf32> to vector<1x128xf32>
      %16 = arith.mulf %12, %12 : vector<256x128xf32>
      %cst_15 = arith.constant dense<0.000000e+00> : vector<128xf32>
      %17 = vector.multi_reduction <add>, %16, %cst_15 [0] : vector<256x128xf32> to vector<128xf32>
      %18 = vector.shape_cast %17 : vector<128xf32> to vector<1x128xf32>
      %19 = tpu.concatenate %15, %18 in 0 : vector<1x128xf32>, vector<1x128xf32> -> vector<2x128xf32>
      %20 = vector.shape_cast %19 : vector<2x128xf32> to vector<1x2x128xf32>
      %c0_16 = arith.constant 0 : index
      %c0_17 = arith.constant 0 : index
      %c0_18 = arith.constant 0 : index
      %21 = vector.load %arg6[%c0_16, %c0_17, %c0_18] : memref<1x2x128xf32, #tpu.memory_space<vmem>>, vector<1x2x128xf32>
      tpu.vector_store %arg6[%c0_16, %c0_17, %c0_18], %20 {strides = array<i32>} : memref<1x2x128xf32, #tpu.memory_space<vmem>>, vector<1x2x128xf32>,
    } else {
    }
    return
  }
  func.func @transform_0(%arg0: i32, %arg1: i32, %arg2: i32) -> (i32, i32) {
    %c0_i32 = arith.constant 0 : i32
    return %arg0, %arg2 : i32, i32
  }
  func.func @transform_1(%arg0: i32, %arg1: i32, %arg2: i32) -> (i32, i32) {
    %c0_i32 = arith.constant 0 : i32
    return %arg2, %arg1 : i32, i32
  }
  func.func @transform_2(%arg0: i32, %arg1: i32, %arg2: i32) -> (i32, i32) {
    %c0_i32 = arith.constant 0 : i32
    return %arg0, %arg1 : i32, i32
  }
  func.func @transform_3(%arg0: i32, %arg1: i32, %arg2: i32) -> (i32, i32, i32) {
    %c0_i32 = arith.constant 0 : i32
    %c0_i32_0 = arith.constant 0 : i32
    return %arg0, %c0_i32, %arg1 : i32, i32, i32
  }
}

</mosaic_0001>

<bundles_post_ra>
// kernel: tpu_custom_call.1
= control target key start
LH: loop header
LB: loop body
LE: loop exit
PB: predicated region body
PF: predicated region fallthrough
CT: control target
= control target key end

     0   :  { %9 = vsyncpa [#allocation4], 0  ;;  %s2191_s0 = inlined_call_operand.hbm [shape: bf16[2048,256], index: 0, kind: input, shape index: {}]   ;;  %s2192_s1 = inlined_call_operand.hbm [shape: bf16[256,128], index: 1, kind: input, shape index: {}]   ;;  %s2193_s2 = inlined_call_operand.hbm [shape: f32[2048,128], index: 2, kind: output, shape index: {0}]   ;;  %s2194_s3 = inlined_call_operand.hbm [shape: f32[8,2,128], index: 3, kind: output, shape index: {1}]  }
   0x1   :  { %11 = vsyncpa [#allocation4 + $0x1], 0 }
   0x2   :  { %12 = vsyncpa [#allocation7], 0 }
   0x3   :  { %13 = vsyncpa [#allocation5], 0 }
   0x4   :  { %15 = vsyncpa [#allocation5 + $0x1], 0 }
   0x5   :  { %16 = vsyncpa [#allocation10], 0 }
   0x6   :  { %18 = vsyncpa [#allocation10 + $0x1], 0  ;;  %s1774_s12 = smov 0   ;;  %s1776_s13 = smov 0  }
   0x7   :  { %s1778_s14 = smov 0   ;;  %s1780_s15 = smov 0  }
   0x8   :  { %s1782_s16 = smov 0   ;;  %s1784_s17 = smov 0  }
   0x9 LB: > { %s1218_s18 = sadd.s32 4294967295, %s1742_s17   ;;  %s1219_s19 = sadd.s32 4294967294, %s1742_s17   ;;  %s1742_s17 = sphi %s1784_s17, %s24_s17   ;;  %s1738_s16 = sphi %s1782_s16, %s2217_s16   ;;  %s1734_s15 = sphi %s1780_s15, %s2216_s15   ;;  %s1730_s14 = sphi %s1778_s14, %s2215_s14   ;;  %s1726_s13 = sphi %s1776_s13, %s2214_s13   ;;  %s1722_s12 = sphi %s1774_s12, %s2213_s12  }
   0xa   : > { %p65_p0 = scmp.ne.s32.totalorder %s1726_s13, %s1722_s12  ;;  %p1808_p1 = scmp.eq.s32.totalorder %s1218_s18, 0 }
   0xb   : > { %p1812_p2 = scmp.eq.s32.totalorder %s1218_s18, 7  ;;  %p125_p3 = scmp.eq.s32.totalorder %s1219_s19, 7 }
   0xc   : > { %s2199_s20 = scalar_select %p1808_p1, 1, 0 }
   0xd   : > { %s2200_s21 = scalar_select %p1812_p2, 1, 0 }
   0xe   : > { %p1818_p4 = por %p1808_p1, %p65_p0  ;;  %p1220_p5 = scmp.ge.s32.totalorder %s1742_s17, 1 }
   0xf   : > { %p1823_p6 = por %p125_p3, %p65_p0  ;;  %p160_p7 = scmp.lt.s32.totalorder %s1742_s17, 9 }
  0x10   : > { %s2201_s22 = scalar_select %p1818_p4, 1, 0 }
  0x11   : > { %s2202_s23 = scalar_select %p1823_p6, 1, 0 }
  0x12   : > { %p1828_p8 = pnand %p1220_p5, %p160_p7  ;;  %s1744_s25 = smov [#allocation6]  }
  0x13   : > { %s176_s26 = sshll.u32 %s1744_s25, 4  ;;  %s43_s28 = sadd.s32 1, %s1738_s16  ;;  %s177_s26 = int_to_ptr.vmem [resolvable:$true] %s176_s26 }
  0x14   : > { %s2203_s24 = scalar_select %p1828_p8, 1, 0 }
  0x15   : > { %p1428_p9 = pneg %p1828_p8  ;;  %s1566_s4 = scalar_lea.hbm %s2192_s1, 2048 }
  0x16   : > { %p1567_p11 = scmp.ne.s32.totalorder %s2192_s1, %s1566_s4  ;;  %p1573_p3 = scmp.lt.u32.totalorder %s1566_s4, %s2192_s1 }
  0x17   : > { %p1836_p10 = pnand %p1428_p9, %p1808_p1 }
  0x19   : > { %p1568_p12 = pneg %p1836_p10 }
  0x1b   : > { %p1569_p13 = pnand %p1568_p12, %p1567_p11 }
  0x1d   : > { %p1570_p0 = pneg %p1569_p13 }
  0x1f   : > { %p1575_p5 = pnand %p1573_p3, %p1570_p0 }
  0x21   : > { %1578 = shalt.err (!%p1575_p5)
}
  0x22   : > { %s1579_s9 = scalar_lea.vmem %s177_s26, 2048  ;;  %p1587_p1 = scmp.lt.s32.totalorder %s177_s26, %s177_s26 }
  0x23   : > { %p1580_p7 = scmp.ne.s32.totalorder %s177_s26, %s1579_s9  ;;  %p1588_p4 = scmp.lt.s32.totalorder %s1579_s9, %s1579_s9 }
  0x25   : > { %p1582_p9 = pnand %p1580_p7, %p1568_p12  ;;  %p1589_p8 = por %p1588_p4, %p1587_p1 }
  0x27   : > { %p1583_p6 = pneg %p1582_p9 }
  0x29   : > { %p1590_p2 = pnand %p1589_p8, %p1583_p6 }
  0x2b   : > { %1593 = shalt.err (!%p1590_p2)
}
  0x2c   : > { %s1745_s10 = smov 64   ;;  %s1746_s11 = smov 4  }
  0x2d   : > { %1431 = dma.hbm_to_vmem [thread:$0]  (!%p1836_p10), %s2192_s1, 2048, %s177_s26, [#allocation7], %s1745_s10, %s1745_s10, %s1746_s11  }
  0x2e   : > { %p45_p1 = scmp.ge.s32.totalorder %s43_s28, 8  ;;  %s52_s25 = sadd.s32 1, %s1730_s14 }
  0x2f   : > { %p59_p2 = scmp.ne.s32.totalorder %s1730_s14, %s1726_s13  ;;  %p60_p4 = scmp.eq.s32.totalorder %s1742_s17, 0 }
  0x30   : > { %s2219_s28 = smov (%p45_p1, %s43_s28), 0  ;;  %p2206_p8 = scmp.ne.s32.totalorder %s2200_s21, 0 }
  0x31   : > { %p1863_p6 = por %p60_p4, %p59_p2  ;;  %s47_s27 = ssub.s32 %s1738_s16, %s2219_s28 }
  0x32   : > { %p1869_p11 = por %p2206_p8, %p59_p2  ;;  %p1444_p12 = scmp.lt.s32.totalorder %s1742_s17, 8 }
  0x33   : > { %p50_p10 = scmp.eq.s32.totalorder %s47_s27, 0  ;;  %s190_s26 = sand.u32 1, %s1730_s14  }
  0x34   : > { %s1223_s4 = sshll.u32 %s190_s26, 8  ;;  %s1288_s6 = sshll.u32 %s1738_s16, 12 }
  0x35   : > { %s1878_s5 = scalar_select %p50_p10, %s1730_s14, %s52_s25  }
  0x36   : > { %s1884_s9 = scalar_lea.hbm %s2191_s0, %s1288_s6  ;;  %s194_s21 = scalar_lea.vmem [#allocation3], %s1223_s4 }
  0x37   : > { %s204_s10 = sshll.u32 %s194_s21, 4  ;;  %p1890_p13 = pnand %p1444_p12, %p1863_p6  ;;  %s1886_s10 = int_to_ptr.vmem [resolvable:$true] %s204_s10 }
  0x38   : > { %s1894_s18 = scalar_lea.sflag [#allocation4], %s190_s26  ;;  %s1594_s19 = scalar_lea.hbm %s1884_s9, 4096 }
  0x39   : > { %p1595_p0 = scmp.ne.s32.totalorder %s1884_s9, %s1594_s19  ;;  %p1596_p3 = pneg %p1890_p13 }
  0x3a   : > { %s1599_s29 = scalar_lea.hbm %s2191_s0, 32768  ;;  %p1600_p9 = scmp.lt.u32.totalorder %s1884_s9, %s2191_s0 }
  0x3b   : > { %p1597_p5 = pnand %p1596_p3, %p1595_p0  ;;  %p1601_p1 = scmp.lt.u32.totalorder %s1599_s29, %s1594_s19 }
  0x3c   : > { %p1603_p4 = scmp.lt.u32.totalorder %s1594_s19, %s1884_s9 }
  0x3d   : > { %p1598_p7 = pneg %p1597_p5  ;;  %p1602_p2 = por %p1601_p1, %p1600_p9 }
  0x3f   : > { %p1604_p6 = por %p1603_p4, %p1602_p2 }
  0x41   : > { %p1605_p8 = pnand %p1604_p6, %p1598_p7 }
  0x43   : > { %1608 = shalt.err (!%p1605_p8)
}
  0x44   : > { %s1609_s26 = scalar_lea.vmem %s1886_s10, 4096  ;;  %s1747_s7 = smov [#allocation3]  }
  0x45   : > { %p1610_p12 = scmp.ne.s32.totalorder %s1886_s10, %s1609_s26  ;;  %s1614_s8 = sshll.u32 %s1747_s7, 4  ;;  %s1615_s8 = int_to_ptr.vmem [resolvable:$false] %s1614_s8 }
  0x46   : > { %s1616_s21 = scalar_lea.vmem %s1615_s8, 8192  ;;  %p1617_p5 = scmp.lt.s32.totalorder %s1886_s10, %s1615_s8 }
  0x47   : > { %p1612_p10 = pnand %p1610_p12, %p1596_p3  ;;  %p1618_p9 = scmp.lt.s32.totalorder %s1616_s21, %s1609_s26 }
  0x49   : > { %p1613_p0 = pneg %p1612_p10  ;;  %p1619_p1 = por %p1618_p9, %p1617_p5 }
  0x4b   : > { %p1620_p2 = pnand %p1619_p1, %p1613_p0 }
  0x4d   : > { %1623 = shalt.err (!%p1620_p2)
}
  0x4e   : > { %s1748_s19 = smov 128   ;;  %s1749_s25 = smov 8  }
  0x4f   : > { %1435 = dma.hbm_to_vmem [thread:$0]  (!%p1890_p13), %s1884_s9, 4096, %s1886_s10, %s1894_s18, %s1748_s19, %s1748_s19, %s1749_s25  }
  0x50   : > { %p2209_p3 = scmp.ne.s32.totalorder %s2203_s24, 0 }
  0x51   : > { %s1925_s27 = sand.u32 (!%p2209_p3), 1, %s1726_s13   ;;  %p2210_p7 = scmp.ne.s32.totalorder (!%p2209_p3), %s2201_s22, 0 }
  0x52   : > { %216 = sbr.rel (%p2209_p3) target bundleno = 473 (0x1d9), region = 28  ;;  %s1228_s29 = sshll.u32 (!%p2209_p3), %s1925_s27, 8 }
  0x53   : > { %s219_s4 = scalar_lea.sflag (!%p2209_p3), [#allocation4], %s1925_s27  ;;  %s1931_s6 = scalar_lea.vmem (!%p2209_p3), [#allocation3], %s1228_s29 }
  0x59   : > { %1705 = dma.done.wait (%p2210_p7), %s219_s4, 4096  }
  0x5a   : > { %1707 = vsyncadd (%p2210_p7), %s219_s4, 4294963200  ;;  %p2211_p13 = scmp.ne.s32.totalorder %s2199_s20, 0 }
  0x5c   : > { %1709 = dma.done.wait (%p2211_p13), [#allocation7], 2048  }
  0x5d   : > { %1711 = vsyncadd (%p2211_p13), [#allocation7], 4294965248  ;;  %v1502_v0 = vld [vmem:[#allocation6 + $0x40] sm:$0xff]   ;;  %v1504_v2 = vld [vmem:[#allocation6 + $0x48] sm:$0xff]   ;;  %s1977_s20 = scalar_lea.vmem [#allocation8], %s1228_s29  ;;  %s1289_s22 = sshll.u32 %s1734_s15, 12 }
  0x5e   : > { %v1503_v1 = vld [vmem:[#allocation6] sm:$0xff]   ;;  %1290 = vmatprep.subr.bf16.mxu0 %v1502_v0  ;;  %1402 = vmatprep.subr.bf16.mxu1 %v1502_v0  ;;  %v1505_v3 = vld [vmem:[#allocation6 + $0x8] sm:$0xff]   ;;  %v1506_v4 = vld [vmem:[#allocation6 + $0x50] sm:$0xff]   ;;  %s1068_s24 = sshll.u32 %s1977_s20, 4  ;;  %s2055_s11 = scalar_lea.hbm %s2193_s2, %s1289_s22  ;;  %s2057_s24 = int_to_ptr.vmem [resolvable:$true] %s1068_s24 }
  0x5f   : > { %1291 = vmatpush3.bf16.msra.mxu0 %v1503_v1  ;;  %1410 = vmatpush3.bf16.msra.mxu1 %v1503_v1  ;;  %v1507_v5 = vld [vmem:[#allocation6 + $0x10] sm:$0xff]   ;;  %v1508_v6 = vld [vmem:[#allocation6 + $0x58] sm:$0xff]   ;;  %v1510_v8 = vld [vmem:[#allocation6 + $0x60] sm:$0xff]   ;;  %s1049_s18 = scalar_lea.sflag [#allocation5], %s1925_s27  ;;  %s1624_s26 = scalar_lea.vmem %s2057_s24, 4096 }
  0x60   : > { %1292 = vmatprep.subr.bf16.mxu0 %v1504_v2  ;;  %1403 = vmatprep.subr.bf16.mxu1 %v1504_v2  ;;  %v1509_v7 = vld [vmem:[#allocation6 + $0x18] sm:$0xff]   ;;  %v1511_v9 = vld [vmem:[#allocation6 + $0x20] sm:$0xff]   ;;  %v1512_v10 = vld [vmem:[#allocation6 + $0x68] sm:$0xff]   ;;  %p1625_p4 = scmp.ne.s32.totalorder %s2057_s24, %s1624_s26  ;;  %s1750_s7 = smov [#allocation8]  }
  0x61   : > { %v1520_v11 = vld [vmem:[%s1931_s6 + $0x4] ss:$8 sps:$4 sm:$0xff]   ;;  %v1514_v13 = vld [vmem:[#allocation6 + $0x70] sm:$0xff]   ;;  %v1516_v16 = vld [vmem:[#allocation6 + $0x78] sm:$0xff]   ;;  %s1628_s8 = sshll.u32 %s1750_s7, 4  ;;  %s1629_s8 = int_to_ptr.vmem [resolvable:$false] %s1628_s8 }
  0x62   : > { %v1513_v12 = vld [vmem:[#allocation6 + $0x28] sm:$0xff]   ;;  %679 = vmatprep.mubr.bf16.mxu0 %v1520_v11  ;;  %v1515_v15 = vld [vmem:[#allocation6 + $0x30] sm:$0xff]   ;;  %v1517_v17 = vld [vmem:[#allocation6 + $0x38] sm:$0xff]   ;;  %p1626_p6 = pnand %p1625_p4, %p1869_p11  ;;  %s1630_s21 = scalar_lea.vmem %s1629_s8, 8192 }
  0x63   : > { %1293 = vmatpush3.bf16.msra.mxu0 %v1505_v3  ;;  %1411 = vmatpush3.bf16.msra.mxu1 %v1505_v3  ;;  %v1532_v14 = vld [vmem:[%s1931_s6 + $0x84] ss:$8 sps:$4 sm:$0xff]   ;;  %v1518_v18 = vld [vmem:[%s1931_s6] ss:$8 sps:$4 sm:$0xff]   ;;  %v1521_v19 = vld [vmem:[%s1931_s6 + $0x14] ss:$8 sps:$4 sm:$0xff]   ;;  %p1631_p12 = scmp.lt.s32.totalorder %s2057_s24, %s1629_s8  ;;  %p1632_p10 = scmp.lt.s32.totalorder %s1630_s21, %s1624_s26 }
  0x64   : > { %1294 = vmatprep.subr.bf16.mxu0 %v1506_v4  ;;  %1404 = vmatprep.subr.bf16.mxu1 %v1506_v4  ;;  %v1530_v20 = vld [vmem:[%s1931_s6 + $0x80] ss:$8 sps:$4 sm:$0xff]   ;;  %v1536_v21 = vld [vmem:[%s1931_s6 + $0x94] ss:$8 sps:$4 sm:$0xff]   ;;  %v1523_v22 = vld [vmem:[%s1931_s6 + $0x10] ss:$8 sps:$4 sm:$0xff]   ;;  %p1627_p8 = pneg %p1626_p6 }
  0x65   : > { %743 = vmatprep.mubr.bf16.mxu1 %v1532_v14  ;;  %v1524_v23 = vld [vmem:[%s1931_s6 + $0x24] ss:$8 sps:$4 sm:$0xff]   ;;  %v1538_v24 = vld [vmem:[%s1931_s6 + $0x90] ss:$8 sps:$4 sm:$0xff]   ;;  %v1526_v26 = vld [vmem:[%s1931_s6 + $0x20] ss:$8 sps:$4 sm:$0xff]   ;;  %p1633_p0 = por %p1632_p10, %p1631_p12 }
  0x66   : > { %v1542_v25 = vld [vmem:[%s1931_s6 + $0xa4] ss:$8 sps:$4 sm:$0xff]   ;;  %v1527_v27 = vld [vmem:[%s1931_s6 + $0x34] ss:$8 sps:$4 sm:$0xff]   ;;  %v1544_v28 = vld [vmem:[%s1931_s6 + $0xa0] ss:$8 sps:$4 sm:$0xff]  }
  0x67   : > { %1295 = vmatpush3.bf16.msra.mxu0 %v1507_v5  ;;  %1412 = vmatpush3.bf16.msra.mxu1 %v1507_v5  ;;  %v1548_v29 = vld [vmem:[%s1931_s6 + $0xb4] ss:$8 sps:$4 sm:$0xff]   ;;  %v1529_v30 = vld [vmem:[%s1931_s6 + $0x30] ss:$8 sps:$4 sm:$0xff]   ;;  %v1533_v31 = vld [vmem:[%s1931_s6 + $0x44] ss:$8 sps:$4 sm:$0xff]   ;;  %p1634_p5 = pnand %p1633_p0, %p1627_p8 }
  0x68   : > { %1296 = vmatprep.subr.bf16.mxu0 %v1508_v6  ;;  %1405 = vmatprep.subr.bf16.mxu1 %v1508_v6  ;;  %v1550_v32 = vld [vmem:[%s1931_s6 + $0xb0] ss:$8 sps:$4 sm:$0xff]   ;;  %v1554_v33 = vld [vmem:[%s1931_s6 + $0xc4] ss:$8 sps:$4 sm:$0xff]   ;;  %v1535_v34 = vld [vmem:[%s1931_s6 + $0x40] ss:$8 sps:$4 sm:$0xff]  }
  0x69   : > { %v1539_v35 = vld [vmem:[%s1931_s6 + $0x54] ss:$8 sps:$4 sm:$0xff]   ;;  %v1556_v36 = vld [vmem:[%s1931_s6 + $0xc0] ss:$8 sps:$4 sm:$0xff]   ;;  %v1541_v38 = vld [vmem:[%s1931_s6 + $0x50] ss:$8 sps:$4 sm:$0xff]  }
  0x6a   : > { %v1557_v37 = vld [vmem:[%s1931_s6 + $0xd4] ss:$8 sps:$4 sm:$0xff]   ;;  %v1545_v39 = vld [vmem:[%s1931_s6 + $0x64] ss:$8 sps:$4 sm:$0xff]   ;;  %v1559_v40 = vld [vmem:[%s1931_s6 + $0xd0] ss:$8 sps:$4 sm:$0xff]  }
  0x6b   : > { %1297 = vmatpush3.bf16.msra.mxu0 %v1509_v7  ;;  %1413 = vmatpush3.bf16.msra.mxu1 %v1509_v7  ;;  %v1560_v41 = vld [vmem:[%s1931_s6 + $0xe4] ss:$8 sps:$4 sm:$0xff]   ;;  %v1547_v42 = vld [vmem:[%s1931_s6 + $0x60] ss:$8 sps:$4 sm:$0xff]   ;;  %v1551_v43 = vld [vmem:[%s1931_s6 + $0x74] ss:$8 sps:$4 sm:$0xff]  }
  0x6c   : > { %1298 = vmatprep.subr.bf16.mxu0 %v1510_v8  ;;  %1406 = vmatprep.subr.bf16.mxu1 %v1510_v8  ;;  %v1562_v44 = vld [vmem:[%s1931_s6 + $0xe0] ss:$8 sps:$4 sm:$0xff]   ;;  %v1563_v45 = vld [vmem:[%s1931_s6 + $0xf4] ss:$8 sps:$4 sm:$0xff]   ;;  %v1553_v46 = vld [vmem:[%s1931_s6 + $0x70] ss:$8 sps:$4 sm:$0xff]  }
  0x6d   : > { %v1565_v47 = vld [vmem:[%s1931_s6 + $0xf0] ss:$8 sps:$4 sm:$0xff]  }
  0x6f   : > { %1299 = vmatpush3.bf16.msra.mxu0 %v1511_v9  ;;  %1414 = vmatpush3.bf16.msra.mxu1 %v1511_v9 }
  0x70   : > { %1300 = vmatprep.subr.bf16.mxu0 %v1512_v10  ;;  %1407 = vmatprep.subr.bf16.mxu1 %v1512_v10 }
  0x73   : > { %1301 = vmatpush3.bf16.msra.mxu0 %v1513_v12  ;;  %1415 = vmatpush3.bf16.msra.mxu1 %v1513_v12 }
  0x74   : > { %1302 = vmatprep.subr.bf16.mxu0 %v1514_v13  ;;  %1408 = vmatprep.subr.bf16.mxu1 %v1514_v13 }
  0x77   : > { %1303 = vmatpush3.bf16.msra.mxu0 %v1515_v15  ;;  %1416 = vmatpush3.bf16.msra.mxu1 %v1515_v15 }
  0x78   : > { %1304 = vmatprep.subr.bf16.mxu0 %v1516_v16  ;;  %1409 = vmatprep.subr.bf16.mxu1 %v1516_v16 }
  0x7b   : > { %1305 = vmatpush3.bf16.msra.mxu0 %v1517_v17  ;;  %1417 = vmatpush3.bf16.msra.mxu1 %v1517_v17 }
  0x7e   : > { %680 = vmatmul.mubr.bf16.vlgmr.msra.gmra.mrb[0].mxu0 %v1518_v18  ;;  %744 = vmatmul.mubr.bf16.vlgmr.msra.gmra.mrb[0].mxu1 %v1530_v20 }
  0x7f   : > { %687 = vmatprep.mubr.bf16.mxu0 %v1521_v19  ;;  %751 = vmatprep.mubr.bf16.mxu1 %v1536_v21 }
  0x86   : > { %688 = vmatmul.mubr.bf16.gmra.mrb[4].mxu0 %v1523_v22  ;;  %752 = vmatmul.mubr.bf16.gmra.mrb[4].mxu1 %v1538_v24 }
  0x87   : > { %695 = vmatprep.mubr.bf16.mxu0 %v1524_v23  ;;  %759 = vmatprep.mubr.bf16.mxu1 %v1542_v25 }
  0x8e   : > { %696 = vmatmul.mubr.bf16.gmra.mrb[8].mxu0 %v1526_v26  ;;  %760 = vmatmul.mubr.bf16.gmra.mrb[8].mxu1 %v1544_v28 }
  0x8f   : > { %703 = vmatprep.mubr.bf16.mxu0 %v1527_v27  ;;  %767 = vmatprep.mubr.bf16.mxu1 %v1548_v29 }
  0x96   : > { %704 = vmatmul.mubr.bf16.gmra.mrb[12].mxu0 %v1529_v30  ;;  %768 = vmatmul.mubr.bf16.gmra.mrb[12].mxu1 %v1550_v32 }
  0x97   : > { %711 = vmatprep.mubr.bf16.mxu0 %v1533_v31  ;;  %775 = vmatprep.mubr.bf16.mxu1 %v1554_v33 }
  0x9e   : > { %712 = vmatmul.mubr.bf16.gmra.mrb[16].mxu0 %v1535_v34  ;;  %776 = vmatmul.mubr.bf16.gmra.mrb[16].mxu1 %v1556_v36 }
  0x9f   : > { %719 = vmatprep.mubr.bf16.mxu0 %v1539_v35  ;;  %783 = vmatprep.mubr.bf16.mxu1 %v1557_v37 }
  0xa6   : > { %720 = vmatmul.mubr.bf16.gmra.mrb[20].mxu0 %v1541_v38  ;;  %784 = vmatmul.mubr.bf16.gmra.mrb[20].mxu1 %v1559_v40 }
  0xa7   : > { %727 = vmatprep.mubr.bf16.mxu0 %v1545_v39  ;;  %791 = vmatprep.mubr.bf16.mxu1 %v1560_v41 }
  0xae   : > { %728 = vmatmul.mubr.bf16.gmra.mrb[24].mxu0 %v1547_v42  ;;  %792 = vmatmul.mubr.bf16.gmra.mrb[24].mxu1 %v1562_v44 }
  0xaf   : > { %735 = vmatprep.mubr.bf16.mxu0 %v1551_v43  ;;  %799 = vmatprep.mubr.bf16.mxu1 %v1563_v45 }
  0xb6   : > { %736 = vmatmul.mubr.bf16.gmra.mrb[28].mxu0 %v1553_v46  ;;  %800 = vmatmul.mubr.bf16.gmra.mrb[28].mxu1 %v1565_v47 }
 0x151   : > { %v1306_v48 = vpop.f32.mrb[0].mxu0  ;;  %v1354_v50 = vpop.f32.mrb[0].mxu1 }
 0x152   : > { %v1307_v49 = vpop.f32.mrb[1].mxu0  ;;  %v1355_v53 = vpop.f32.mrb[1].mxu1 }
 0x153   : > { %v1308_v51 = vadd.f32 %v1307_v49, %v1306_v48  ;;  %v1309_v52 = vpop.f32.mrb[2].mxu0  ;;  %v1973_v55 = vadd.f32 %v1355_v53, %v1354_v50  ;;  %v1357_v56 = vpop.f32.mrb[2].mxu1 }
 0x154   : > { %v1310_v54 = vpop.f32.mrb[3].mxu0  ;;  %v1358_v58 = vpop.f32.mrb[3].mxu1 }
 0x155   : > { %907 = vst [vmem:[%s1977_s20] sm:$0xff] %v1308_v51  ;;  %v1311_v57 = vadd.f32 %v1310_v54, %v1309_v52  ;;  %923 = vst [vmem:[%s1977_s20 + $0x80] sm:$0xff] %v1973_v55  ;;  %v1982_v59 = vadd.f32 %v1358_v58, %v1357_v56  ;;  %v976_v60 = vmul.f32 %v1308_v51, %v1308_v51 }
 0x157   : > { %908 = vst [vmem:[%s1977_s20 + $0x8] sm:$0xff] %v1311_v57  ;;  %v939_v61 = vadd.f32 %v1311_v57, %v1308_v51  ;;  %v977_v62 = vmul.f32 %v1311_v57, %v1311_v57  ;;  %924 = vst [vmem:[%s1977_s20 + $0x88] sm:$0xff] %v1982_v59 }
 0x159   : > { %v1008_v63 = vadd.f32 %v977_v62, %v976_v60  ;;  %v1312_v0 = vpop.f32.mrb[4].mxu0  ;;  %v1360_v2 = vpop.f32.mrb[4].mxu1 }
 0x15a   : > { %v1313_v1 = vpop.f32.mrb[5].mxu0  ;;  %v1361_v5 = vpop.f32.mrb[5].mxu1 }
 0x15b   : > { %v1314_v3 = vadd.f32 %v1313_v1, %v1312_v0  ;;  %v1315_v4 = vpop.f32.mrb[6].mxu0  ;;  %v1987_v7 = vadd.f32 %v1361_v5, %v1360_v2  ;;  %v1363_v8 = vpop.f32.mrb[6].mxu1 }
 0x15c   : > { %v1316_v6 = vpop.f32.mrb[7].mxu0  ;;  %v1364_v12 = vpop.f32.mrb[7].mxu1 }
 0x15d   : > { %909 = vst [vmem:[%s1977_s20 + $0x10] sm:$0xff] %v1314_v3  ;;  %v940_v9 = vadd.f32 %v1314_v3, %v939_v61  ;;  %v978_v10 = vmul.f32 %v1314_v3, %v1314_v3  ;;  %v1317_v11 = vadd.f32 %v1316_v6, %v1315_v4  ;;  %925 = vst [vmem:[%s1977_s20 + $0x90] sm:$0xff] %v1987_v7 }
 0x15e   : > { %v1992_v13 = vadd.f32 %v1364_v12, %v1363_v8 }
 0x15f   : > { %v1009_v14 = vadd.f32 %v1008_v63, %v978_v10  ;;  %910 = vst [vmem:[%s1977_s20 + $0x18] sm:$0xff] %v1317_v11  ;;  %v941_v15 = vadd.f32 %v1317_v11, %v940_v9  ;;  %v979_v16 = vmul.f32 %v1317_v11, %v1317_v11 }
 0x160   : > { %926 = vst [vmem:[%s1977_s20 + $0x98] sm:$0xff] %v1992_v13 }
 0x161   : > { %v1010_v17 = vadd.f32 %v1009_v14, %v979_v16  ;;  %v1318_v18 = vpop.f32.mrb[8].mxu0  ;;  %v1366_v20 = vpop.f32.mrb[8].mxu1 }
 0x162   : > { %v1319_v19 = vpop.f32.mrb[9].mxu0  ;;  %v1367_v23 = vpop.f32.mrb[9].mxu1 }
 0x163   : > { %v1320_v21 = vadd.f32 %v1319_v19, %v1318_v18  ;;  %v1321_v22 = vpop.f32.mrb[10].mxu0  ;;  %v1997_v25 = vadd.f32 %v1367_v23, %v1366_v20  ;;  %v1369_v26 = vpop.f32.mrb[10].mxu1 }
 0x164   : > { %v1322_v24 = vpop.f32.mrb[11].mxu0  ;;  %v1370_v30 = vpop.f32.mrb[11].mxu1 }
 0x165   : > { %911 = vst [vmem:[%s1977_s20 + $0x20] sm:$0xff] %v1320_v21  ;;  %v942_v27 = vadd.f32 %v1320_v21, %v941_v15  ;;  %v980_v28 = vmul.f32 %v1320_v21, %v1320_v21  ;;  %v1323_v29 = vadd.f32 %v1322_v24, %v1321_v22  ;;  %927 = vst [vmem:[%s1977_s20 + $0xa0] sm:$0xff] %v1997_v25 }
 0x166   : > { %v2002_v31 = vadd.f32 %v1370_v30, %v1369_v26 }
 0x167   : > { %v1011_v32 = vadd.f32 %v1010_v17, %v980_v28  ;;  %912 = vst [vmem:[%s1977_s20 + $0x28] sm:$0xff] %v1323_v29  ;;  %v943_v33 = vadd.f32 %v1323_v29, %v942_v27  ;;  %v981_v34 = vmul.f32 %v1323_v29, %v1323_v29 }
 0x168   : > { %928 = vst [vmem:[%s1977_s20 + $0xa8] sm:$0xff] %v2002_v31 }
 0x169   : > { %v1012_v35 = vadd.f32 %v1011_v32, %v981_v34  ;;  %v1324_v36 = vpop.f32.mrb[12].mxu0  ;;  %v1372_v38 = vpop.f32.mrb[12].mxu1 }
 0x16a   : > { %v1325_v37 = vpop.f32.mrb[13].mxu0  ;;  %v1373_v41 = vpop.f32.mrb[13].mxu1 }
 0x16b   : > { %v1326_v39 = vadd.f32 %v1325_v37, %v1324_v36  ;;  %v1327_v40 = vpop.f32.mrb[14].mxu0  ;;  %v2007_v43 = vadd.f32 %v1373_v41, %v1372_v38  ;;  %v1375_v44 = vpop.f32.mrb[14].mxu1 }
 0x16c   : > { %v1328_v42 = vpop.f32.mrb[15].mxu0  ;;  %v1376_v48 = vpop.f32.mrb[15].mxu1 }
 0x16d   : > { %913 = vst [vmem:[%s1977_s20 + $0x30] sm:$0xff] %v1326_v39  ;;  %v944_v45 = vadd.f32 %v1326_v39, %v943_v33  ;;  %v982_v46 = vmul.f32 %v1326_v39, %v1326_v39  ;;  %v1329_v47 = vadd.f32 %v1328_v42, %v1327_v40  ;;  %929 = vst [vmem:[%s1977_s20 + $0xb0] sm:$0xff] %v2007_v43 }
 0x16e   : > { %v2012_v49 = vadd.f32 %v1376_v48, %v1375_v44 }
 0x16f   : > { %v1013_v50 = vadd.f32 %v1012_v35, %v982_v46  ;;  %914 = vst [vmem:[%s1977_s20 + $0x38] sm:$0xff] %v1329_v47  ;;  %v945_v51 = vadd.f32 %v1329_v47, %v944_v45  ;;  %v983_v52 = vmul.f32 %v1329_v47, %v1329_v47 }
 0x170   : > { %930 = vst [vmem:[%s1977_s20 + $0xb8] sm:$0xff] %v2012_v49 }
 0x171   : > { %v1014_v53 = vadd.f32 %v1013_v50, %v983_v52  ;;  %v1330_v54 = vpop.f32.mrb[16].mxu0  ;;  %v1378_v57 = vpop.f32.mrb[16].mxu1 }
 0x172   : > { %v1331_v56 = vpop.f32.mrb[17].mxu0  ;;  %v1379_v61 = vpop.f32.mrb[17].mxu1 }
 0x173   : > { %v1332_v58 = vadd.f32 %v1331_v56, %v1330_v54  ;;  %v1333_v60 = vpop.f32.mrb[18].mxu0  ;;  %v2017_v63 = vadd.f32 %v1379_v61, %v1378_v57  ;;  %v1381_v0 = vpop.f32.mrb[18].mxu1 }
 0x174   : > { %v1334_v62 = vpop.f32.mrb[19].mxu0  ;;  %v1382_v4 = vpop.f32.mrb[19].mxu1 }
 0x175   : > { %915 = vst [vmem:[%s1977_s20 + $0x40] sm:$0xff] %v1332_v58  ;;  %v946_v1 = vadd.f32 %v1332_v58, %v945_v51  ;;  %v984_v2 = vmul.f32 %v1332_v58, %v1332_v58  ;;  %v1335_v3 = vadd.f32 %v1334_v62, %v1333_v60  ;;  %931 = vst [vmem:[%s1977_s20 + $0xc0] sm:$0xff] %v2017_v63 }
 0x176   : > { %v2022_v5 = vadd.f32 %v1382_v4, %v1381_v0 }
 0x177   : > { %v1015_v6 = vadd.f32 %v1014_v53, %v984_v2  ;;  %916 = vst [vmem:[%s1977_s20 + $0x48] sm:$0xff] %v1335_v3  ;;  %v947_v8 = vadd.f32 %v1335_v3, %v946_v1  ;;  %v985_v9 = vmul.f32 %v1335_v3, %v1335_v3 }
 0x178   : > { %932 = vst [vmem:[%s1977_s20 + $0xc8] sm:$0xff] %v2022_v5 }
 0x179   : > { %v1016_v10 = vadd.f32 %v1015_v6, %v985_v9  ;;  %v1336_v11 = vpop.f32.mrb[20].mxu0  ;;  %v1384_v14 = vpop.f32.mrb[20].mxu1 }
 0x17a   : > { %v1337_v12 = vpop.f32.mrb[21].mxu0  ;;  %v1385_v17 = vpop.f32.mrb[21].mxu1 }
 0x17b   : > { %v1338_v15 = vadd.f32 %v1337_v12, %v1336_v11  ;;  %v1339_v16 = vpop.f32.mrb[22].mxu0  ;;  %v2027_v19 = vadd.f32 %v1385_v17, %v1384_v14  ;;  %v1387_v20 = vpop.f32.mrb[22].mxu1 }
 0x17c   : > { %v1340_v18 = vpop.f32.mrb[23].mxu0  ;;  %v1388_v24 = vpop.f32.mrb[23].mxu1 }
 0x17d   : > { %917 = vst [vmem:[%s1977_s20 + $0x50] sm:$0xff] %v1338_v15  ;;  %v948_v21 = vadd.f32 %v1338_v15, %v947_v8  ;;  %v986_v22 = vmul.f32 %v1338_v15, %v1338_v15  ;;  %v1341_v23 = vadd.f32 %v1340_v18, %v1339_v16  ;;  %933 = vst [vmem:[%s1977_s20 + $0xd0] sm:$0xff] %v2027_v19 }
 0x17e   : > { %v2032_v26 = vadd.f32 %v1388_v24, %v1387_v20 }
 0x17f   : > { %v1017_v27 = vadd.f32 %v1016_v10, %v986_v22  ;;  %918 = vst [vmem:[%s1977_s20 + $0x58] sm:$0xff] %v1341_v23  ;;  %v949_v28 = vadd.f32 %v1341_v23, %v948_v21  ;;  %v987_v29 = vmul.f32 %v1341_v23, %v1341_v23  ;;  %v992_v10 = vmul.f32 %v1973_v55, %v1973_v55 }
 0x180   : > { %934 = vst [vmem:[%s1977_s20 + $0xd8] sm:$0xff] %v2032_v26 }
 0x181   : > { %v1018_v30 = vadd.f32 %v1017_v27, %v987_v29  ;;  %v1342_v32 = vpop.f32.mrb[24].mxu0  ;;  %v1390_v34 = vpop.f32.mrb[24].mxu1 }
 0x182   : > { %v1343_v33 = vpop.f32.mrb[25].mxu0  ;;  %v1391_v37 = vpop.f32.mrb[25].mxu1 }
 0x183   : > { %v1344_v35 = vadd.f32 %v1343_v33, %v1342_v32  ;;  %v1345_v36 = vpop.f32.mrb[26].mxu0  ;;  %v2037_v39 = vadd.f32 %v1391_v37, %v1390_v34  ;;  %v1393_v40 = vpop.f32.mrb[26].mxu1 }
 0x184   : > { %v1346_v38 = vpop.f32.mrb[27].mxu0  ;;  %v1394_v45 = vpop.f32.mrb[27].mxu1 }
 0x185   : > { %919 = vst [vmem:[%s1977_s20 + $0x60] sm:$0xff] %v1344_v35  ;;  %v950_v41 = vadd.f32 %v1344_v35, %v949_v28  ;;  %v988_v42 = vmul.f32 %v1344_v35, %v1344_v35  ;;  %v1347_v44 = vadd.f32 %v1346_v38, %v1345_v36  ;;  %935 = vst [vmem:[%s1977_s20 + $0xe0] sm:$0xff] %v2037_v39 }
 0x186   : > { %v2042_v46 = vadd.f32 %v1394_v45, %v1393_v40 }
 0x187   : > { %v1019_v47 = vadd.f32 %v1018_v30, %v988_v42  ;;  %920 = vst [vmem:[%s1977_s20 + $0x68] sm:$0xff] %v1347_v44  ;;  %v951_v48 = vadd.f32 %v1347_v44, %v950_v41  ;;  %v989_v50 = vmul.f32 %v1347_v44, %v1347_v44 }
 0x188   : > { %936 = vst [vmem:[%s1977_s20 + $0xe8] sm:$0xff] %v2042_v46 }
 0x189   : > { %v1020_v51 = vadd.f32 %v1019_v47, %v989_v50  ;;  %v1348_v52 = vpop.f32.mrb[28].mxu0  ;;  %v1396_v54 = vpop.f32.mrb[28].mxu1 }
 0x18a   : > { %v1349_v53 = vpop.f32.mrb[29].mxu0  ;;  %v1397_v58 = vpop.f32.mrb[29].mxu1 }
 0x18b   : > { %v1350_v56 = vadd.f32 %v1349_v53, %v1348_v52  ;;  %v1351_v57 = vpop.f32.mrb[30].mxu0  ;;  %v2049_v61 = vadd.f32 %v1397_v58, %v1396_v54  ;;  %v1399_v62 = vpop.f32.mrb[30].mxu1 }
 0x18c   : > { %v1352_v60 = vpop.f32.mrb[31].mxu0  ;;  %v1400_v3 = vpop.f32.mrb[31].mxu1 }
 0x18d   : > { %921 = vst [vmem:[%s1977_s20 + $0x70] sm:$0xff] %v1350_v56  ;;  %v952_v0 = vadd.f32 %v1350_v56, %v951_v48  ;;  %v990_v1 = vmul.f32 %v1350_v56, %v1350_v56  ;;  %v1353_v2 = vadd.f32 %v1352_v60, %v1351_v57  ;;  %937 = vst [vmem:[%s1977_s20 + $0xf0] sm:$0xff] %v2049_v61 }
 0x18e   : > { %v2061_v4 = vadd.f32 %v1400_v3, %v1399_v62 }
 0x18f   : > { %v1021_v6 = vadd.f32 %v1020_v51, %v990_v1  ;;  %922 = vst [vmem:[%s1977_s20 + $0x78] sm:$0xff] %v1353_v2  ;;  %v953_v8 = vadd.f32 %v1353_v2, %v952_v0  ;;  %v991_v9 = vmul.f32 %v1353_v2, %v1353_v2 }
 0x190   : > { %938 = vst [vmem:[%s1977_s20 + $0xf8] sm:$0xff] %v2061_v4 }
 0x191   : > { %v954_v11 = vadd.f32 %v1973_v55, %v953_v8  ;;  %v1022_v12 = vadd.f32 %v1021_v6, %v991_v9 }
 0x192   : > { %1637 = shalt.err (!%p1634_p5)
}
 0x193   : > { %s1638_s19 = scalar_lea.hbm %s2055_s11, 4096  ;;  %s1642_s4 = scalar_lea.hbm %s2193_s2, 32768 }
 0x194   : > { %p1639_p9 = scmp.ne.s32.totalorder %s2055_s11, %s1638_s19  ;;  %p1643_p3 = scmp.lt.u32.totalorder %s2055_s11, %s2193_s2 }
 0x195   : > { %p1644_p7 = scmp.lt.u32.totalorder %s1642_s4, %s1638_s19  ;;  %p1646_p4 = scmp.lt.u32.totalorder %s1638_s19, %s2055_s11 }
 0x196   : > { %p1640_p1 = pnand %p1639_p9, %p1869_p11 }
 0x197   : > { %p1645_p13 = por %p1644_p7, %p1643_p3 }
 0x198   : > { %p1641_p2 = pneg %p1640_p1 }
 0x199   : > { %p1647_p6 = por %p1646_p4, %p1645_p13 }
 0x19b   : > { %p1648_p8 = pnand %p1647_p6, %p1641_p2 }
 0x19d   : > { %1651 = shalt.err (!%p1648_p8)
}
 0x19e   : > { %s1751_s22 = smov 128   ;;  %s1752_s9 = smov 8   ;;  %v993_v55 = vmul.f32 %v1982_v59, %v1982_v59  ;;  %v955_v14 = vadd.f32 %v1982_v59, %v954_v11  ;;  %v1023_v15 = vadd.f32 %v1022_v12, %v992_v10  ;;  %v994_v16 = vmul.f32 %v1987_v7, %v1987_v7 }
 0x19f   : > { %1424 = dma.vmem_to_hbm [thread:$0]  (%p1869_p11), %s2057_s24, 4096, %s2055_s11, %s1049_s18, %s1751_s22, %s1751_s22, %s1752_s9   ;;  %v995_v20 = vmul.f32 %v1992_v13, %v1992_v13  ;;  %v996_v23 = vmul.f32 %v1997_v25, %v1997_v25  ;;  %v997_v59 = vmul.f32 %v2002_v31, %v2002_v31  ;;  %v1000_v35 = vmul.f32 %v2017_v63, %v2017_v63 }
 0x1a0   : > { %v956_v17 = vadd.f32 %v1987_v7, %v955_v14  ;;  %v1024_v18 = vadd.f32 %v1023_v15, %v993_v55  ;;  %v998_v7 = vmul.f32 %v2007_v43, %v2007_v43  ;;  %v1001_v38 = vmul.f32 %v2022_v5, %v2022_v5  ;;  %s1231_s24 = sshll.u32 %s1925_s27, 1  ;;  %s1284_s10 = sshll.u32 %s1734_s15, 5 }
 0x1a1   : > { %v1002_v41 = vmul.f32 %v2027_v19, %v2027_v19  ;;  %v1003_v44 = vmul.f32 %v2032_v26, %v2032_v26  ;;  %v1004_v47 = vmul.f32 %v2037_v39, %v2037_v39  ;;  %v1005_v50 = vmul.f32 %v2042_v46, %v2042_v46  ;;  %s253_s11 = scalar_lea.vmem [#allocation9], %s1231_s24  ;;  %s2143_s8 = scalar_lea.hbm %s2194_s3, %s1284_s10 }
 0x1a2   : > { %v957_v21 = vadd.f32 %v1992_v13, %v956_v17  ;;  %v1025_v22 = vadd.f32 %v1024_v18, %v994_v16  ;;  %v999_v13 = vmul.f32 %v2012_v49, %v2012_v49  ;;  %s1085_s18 = sshll.u32 %s253_s11, 4  ;;  %vm1045_vm0 = vcmask 1040384   ;;  %s1054_s21 = scalar_lea.sflag [#allocation10], %s1925_s27  ;;  %s2145_s18 = int_to_ptr.vmem [resolvable:$true] %s1085_s18 }
 0x1a3   : > { %s1652_s19 = scalar_lea.vmem %s2145_s18, 32  ;;  %s1753_s15 = smov [#allocation9]  }
 0x1a4   : > { %v1026_v24 = vadd.f32 %v1025_v22, %v995_v20  ;;  %v958_v27 = vadd.f32 %v1997_v25, %v957_v21  ;;  %p1653_p12 = scmp.ne.s32.totalorder %s2145_s18, %s1652_s19  ;;  %s1656_s25 = sshll.u32 %s1753_s15, 4  ;;  %s1657_s25 = int_to_ptr.vmem [resolvable:$false] %s1656_s25 }
 0x1a5   : > { %s1658_s29 = scalar_lea.vmem %s1657_s25, 64  ;;  %p1659_p5 = scmp.lt.s32.totalorder %s2145_s18, %s1657_s25 }
 0x1a6   : > { %v959_v28 = vadd.f32 %v2002_v31, %v958_v27  ;;  %v1027_v29 = vadd.f32 %v1026_v24, %v996_v23  ;;  %p1654_p10 = pnand %p1653_p12, %p1869_p11  ;;  %p1660_p9 = scmp.lt.s32.totalorder %s1658_s29, %s1652_s19 }
 0x1a8   : > { %v960_v30 = vadd.f32 %v2007_v43, %v959_v28  ;;  %v1028_v32 = vadd.f32 %v1027_v29, %v997_v59  ;;  %p1655_p0 = pneg %p1654_p10  ;;  %p1661_p1 = por %p1660_p9, %p1659_p5 }
 0x1aa   : > { %v961_v33 = vadd.f32 %v2012_v49, %v960_v30  ;;  %v1029_v34 = vadd.f32 %v1028_v32, %v998_v7  ;;  %p1662_p2 = pnand %p1661_p1, %p1655_p0 }
 0x1ac   : > { %v962_v25 = vadd.f32 %v2017_v63, %v961_v33  ;;  %v1030_v36 = vadd.f32 %v1029_v34, %v999_v13 }
 0x1ae   : > { %v1031_v31 = vadd.f32 %v1030_v36, %v1000_v35  ;;  %v963_v37 = vadd.f32 %v2022_v5, %v962_v25 }
 0x1b0   : > { %v1032_v43 = vadd.f32 %v1031_v31, %v1001_v38  ;;  %v964_v40 = vadd.f32 %v2027_v19, %v963_v37  ;;  %v1006_v19 = vmul.f32 %v2049_v61, %v2049_v61 }
 0x1b2   : > { %v1033_v49 = vadd.f32 %v1032_v43, %v1002_v41  ;;  %v965_v42 = vadd.f32 %v2032_v26, %v964_v40 }
 0x1b4   : > { %v1034_v63 = vadd.f32 %v1033_v49, %v1003_v44  ;;  %v966_v45 = vadd.f32 %v2037_v39, %v965_v42  ;;  %v1007_v39 = vmul.f32 %v2061_v4, %v2061_v4 }
 0x1b6   : > { %v1035_v5 = vadd.f32 %v1034_v63, %v1004_v47  ;;  %v967_v48 = vadd.f32 %v2042_v46, %v966_v45 }
 0x1b8   : > { %v1036_v51 = vadd.f32 %v1035_v5, %v1005_v50  ;;  %v968_v52 = vadd.f32 %v2049_v61, %v967_v48 }
 0x1ba   : > { %v1037_v26 = vadd.f32 %v1036_v51, %v1006_v19  ;;  %v969_v53 = vadd.f32 %v2061_v4, %v968_v52 }
 0x1bc   : > { %v970_v54 = vrot.slane %v969_v53, 4  ;;  %v1038_v56 = vadd.f32 %v1037_v26, %v1007_v39 }
 0x1be   : > { %v971_v57 = vadd.f32 %v970_v54, %v969_v53  ;;  %v1039_v58 = vrot.slane %v1038_v56, 4 }
 0x1c0   : > { %v972_v60 = vrot.slane %v971_v57, 2  ;;  %v1040_v62 = vadd.f32 %v1039_v58, %v1038_v56 }
 0x1c2   : > { %v973_v46 = vadd.f32 %v972_v60, %v971_v57  ;;  %v1041_v0 = vrot.slane %v1040_v62, 2 }
 0x1c4   : > { %v974_v1 = vrot.slane %v973_v46, 1  ;;  %v1042_v61 = vadd.f32 %v1041_v0, %v1040_v62 }
 0x1c6   : > { %v1043_v2 = vrot.slane %v1042_v61, 1  ;;  %v975_v3 = vadd.f32 %v974_v1, %v973_v46 }
 0x1c8   : > { %v1044_v4 = vadd.f32 %v1043_v2, %v1042_v61 }
 0x1ca   : > { %v1046_v6 = vsel %vm1045_vm0, %v975_v3, %v1044_v4 }
 0x1cb   : > { %1047 = vst [vmem:[%s253_s11] sm:$0x3] %v1046_v6 }
 0x1cc   : > { %1665 = shalt.err (!%p1662_p2)
}
 0x1cd   : > { %s1666_s27 = scalar_lea.hbm %s2143_s8, 32  ;;  %s1670_s20 = scalar_lea.hbm %s2194_s3, 256 }
 0x1ce   : > { %p1667_p3 = scmp.ne.s32.totalorder %s2143_s8, %s1666_s27  ;;  %p1671_p4 = scmp.lt.u32.totalorder %s2143_s8, %s2194_s3 }
 0x1cf   : > { %p1672_p6 = scmp.lt.u32.totalorder %s1670_s20, %s1666_s27  ;;  %p1674_p12 = scmp.lt.u32.totalorder %s1666_s27, %s2143_s8 }
 0x1d0   : > { %p1668_p7 = pnand %p1667_p3, %p1869_p11 }
 0x1d1   : > { %p1673_p8 = por %p1672_p6, %p1671_p4 }
 0x1d2   : > { %p1669_p13 = pneg %p1668_p7 }
 0x1d3   : > { %p1675_p10 = por %p1674_p12, %p1673_p8 }
 0x1d5   : > { %p1676_p0 = pnand %p1675_p10, %p1669_p13 }
 0x1d7   : > { %1679 = shalt.err (!%p1676_p0)
}
 0x1d8   : > { %1425 = dma.vmem_to_hbm [thread:$0]  (%p1869_p11), %s2145_s18, 32, %s2143_s8, %s1054_s21  }
 0x1d9 PF: > { %p1446_p5 = scmp.ge.s32.totalorder %s1742_s17, 2  ;;  %s1097_s24 = sand.u32 1, %s1722_s12  }
 0x1da   : > { %p2212_p9 = scmp.ne.s32.totalorder %s2202_s23, 0  ;;  %s1098_s10 = scalar_lea.sflag [#allocation5], %s1097_s24 }
 0x1dc   : > { %p1437_p1 = pnand %p1446_p5, %p2212_p9 }
 0x1de   : > { %1713 = dma.done.wait (!%p1437_p1), %s1098_s10, 4096  }
 0x1df   : > { %1715 = vsyncadd (!%p1437_p1), %s1098_s10, 4294963200  ;;  %s1107_s11 = scalar_lea.sflag [#allocation10], %s1097_s24 }
 0x1e0   : > { %1717 = dma.done.wait (!%p1437_p1), %s1107_s11, 32  }
 0x1e1   : > { %1719 = vsyncadd (!%p1437_p1), %s1107_s11, 4294967264  ;;  %s24_s17 = sadd.s32 1, %s1742_s17   ;;  %s2213_s12 = smov %s1726_s13 }
 0x1e2   : > { %p21_p2 = scmp.ge.s32.totalorder %s24_s17, 10   ;;  %s2214_s13 = smov %s1730_s14 }
 0x1e3   : > { %s2215_s14 = smov %s1878_s5  ;;  %s2216_s15 = smov %s1738_s16 }
 0x1e4   : > { %s2217_s16 = smov %s2219_s28  ;;  %23 = sbr.rel (!%p21_p2) target bundleno = 9 (0x9), region = 103 }
 0x1eb   :  { %1112 = vsyncpa [#allocation4], 1 }
 0x1ec   :  { %1114 = vsyncpa [#allocation4 + $0x1], 1 }
 0x1ed   :  { %1115 = vsyncpa [#allocation7], 1 }
 0x1ee   :  { %1116 = vsyncpa [#allocation5], 1 }
 0x1ef   :  { %1118 = vsyncpa [#allocation5 + $0x1], 1 }
 0x1f0   :  { %1119 = vsyncpa [#allocation10], 1 }
 0x1f1   :  { %1121 = vsyncpa [#allocation10 + $0x1], 1 }

</bundles_post_ra>
